<compile_context>
chip_gen: v7x
topology: tpu7x:2x2x1
jax: 0.10.0
libtpu: 0.0.40
codegen_flags: <defaults>
</compile_context>

<pallas_src>
import functools
import math

import numpy as np

import jax
import jax.numpy as jnp
from jax import lax
from jax.experimental import pallas as pl
from jax.experimental.pallas import tpu as pltpu

_EULER_GAMMA = 0.57721566490153286
# Value the in-kernel series produces at clamped index 1 (used for j in {0,1}).
_H_SERIES_AT_1 = _EULER_GAMMA + 0.5 - 1.0 / 12.0


def _harmonic_scalar(n):
    """H_n as a Python float (double precision, error << 1e-9)."""
    if n <= 0:
        return 0.0
    if n < 1024:
        return float(sum(1.0 / k for k in range(1, n + 1)))
    inv = 1.0 / n
    return (math.log(n) + _EULER_GAMMA + 0.5 * inv
            - inv * inv / 12.0 + inv ** 4 / 120.0)


def _accuracy_kernel(x_ref, y_ref, o_ref, idx_ref, *,
                     acc_thresh, coeff, coeff_hn, rows, block_rows, lanes,
                     blocks_per_partial):
    c = pl.program_id(0)                 # parallel partial (v7x: one per TC)
    b = pl.program_id(1)                 # reduction over this partial's blocks
    gblk = c * blocks_per_partial + b    # UNclamped global block index

    @pl.when(b == 0)
    def _():
        # Zero this partial's resident accumulator and fill the hoisted
        # local-index table once per partial (amortized over all blocks).
        o_ref[...] = jnp.zeros_like(o_ref)
        r_i = lax.broadcasted_iota(jnp.int32, (block_rows, lanes), 0)
        c_i = lax.broadcasted_iota(jnp.int32, (block_rows, lanes), 1)
        idx_ref[...] = (r_i * lanes + c_i).astype(jnp.float32)

    x = x_ref[...].astype(jnp.float32)
    y = y_ref[...].astype(jnp.float32)

    # Global element index as f32: one add/element thanks to the hoisted local
    # index.  f32 rounding above 2^24 elements only perturbs the smooth
    # harmonic weight by O(1e-7) relative -- harmless (masking uses int rows).
    base = (gblk * block_rows).astype(jnp.float32) * float(lanes)
    k = base + idx_ref[...]

    # w_j = coeff * (H_N - H_j) via a trimmed asymptotic series.  j in {0, 1}
    # is corrected exactly in the wrapper.
    safe = jnp.maximum(k, 1.0)
    inv = pl.reciprocal(safe, approx=True)                 # EUP slot
    h = jnp.log(safe) + _EULER_GAMMA + 0.5 * inv - (1.0 / 12.0) * (inv * inv)
    w = coeff_hn - coeff * h

    # Keep the exact divide to match torch.div semantics (signs, y == 0).
    hit = (y - x) / y <= acc_thresh
    contrib = jnp.where(hit, w, 0.0)

    is_full = (gblk + 1) * block_rows <= rows              # exact int32 check

    @pl.when(is_full)
    def _():
        # Fast path: every row of this block is valid -> no mask ops at all.
        o_ref[...] += contrib.reshape(-1, 8, lanes).sum(axis=0)

    @pl.when(jnp.logical_not(is_full))
    def _():
        # Last (partial) block, or a phantom block of the 2-way split whose
        # data index_map clamped onto the last real block: mask by global row.
        local_row = lax.broadcasted_iota(jnp.int32, (block_rows, lanes), 0)
        valid = gblk * block_rows + local_row < rows
        o_ref[...] += jnp.where(valid, contrib,
                                0.0).reshape(-1, 8, lanes).sum(axis=0)


def _accuracy_small(x, y, acc_thresh):
    """Exact plain-JAX path for inputs too small to justify a kernel launch."""
    x = x.astype(jnp.float32)
    y = y.astype(jnp.float32)
    n = x.shape[0]
    hit = ((y - x) / y) <= acc_thresh
    correct = jnp.cumsum(hit.astype(jnp.float32))
    running = 100.0 * correct / jnp.arange(1, n + 1, dtype=jnp.float32)
    return jnp.mean(running)


def _tail_sum(x, y, start, stop, acc_thresh, coeff, h_n):
    """Plain-JAX contribution of elements [start, stop); start >= 1024 here."""
    if stop <= start:
        return jnp.float32(0.0)
    xs = x[start:stop].astype(jnp.float32)
    ys = y[start:stop].astype(jnp.float32)
    j = jnp.arange(start, stop, dtype=jnp.float32)
    inv = 1.0 / j
    inv2 = inv * inv
    h = (jnp.log(j) + _EULER_GAMMA + 0.5 * inv
         - inv2 / 12.0 + inv2 * inv2 / 120.0)
    hit = (ys - xs) / ys <= acc_thresh
    return jnp.sum(jnp.where(hit, jnp.float32(coeff) * (h_n - h),
                             jnp.float32(0.0)))


def accuracy_pallas(predictions, labels, acc_thresh=0.1, *,
                    lanes=512, block_rows=2048):
    """Pallas TPU implementation of Accuracy.forward. Returns an f32 scalar."""
    x = jnp.asarray(predictions).reshape(-1)
    y = jnp.asarray(labels).reshape(-1)
    # Stream narrow floats at native width (upcast happens in-kernel).
    if x.dtype not in (jnp.float32, jnp.bfloat16, jnp.float16):
        x = x.astype(jnp.float32)
    if y.dtype not in (jnp.float32, jnp.bfloat16, jnp.float16):
        y = y.astype(jnp.float32)
    n = int(x.shape[0])
    if n == 0:
        return jnp.float32(jnp.nan)      # mean of an empty list
    acc_thresh = float(acc_thresh)

    assert lanes % 128 == 0
    rows = n // lanes
    if rows < 8:
        return _accuracy_small(x, y, acc_thresh)

    coeff = 100.0 / n
    h_n = _harmonic_scalar(n)

    block_rows = max(8, (min(int(block_rows), rows) // 8) * 8)
    num_blocks = pl.cdiv(rows, block_rows)
    num_partials = 2 if num_blocks >= 2 else 1   # v7x: one partial per TC
    bpp = pl.cdiv(num_blocks, num_partials)

    n_bulk = rows * lanes
    xb = x[:n_bulk].reshape(rows, lanes)         # contiguous prefix -> cheap
    yb = y[:n_bulk].reshape(rows, lanes)

    def data_map(c, b):
        # Phantom blocks (num_partials*bpp > num_blocks) clamp onto the last
        # real block; the kernel masks their contribution to zero.
        return (jnp.minimum(c * bpp + b, num_blocks - 1), 0)

    kernel = functools.partial(
        _accuracy_kernel, acc_thresh=acc_thresh, coeff=coeff,
        coeff_hn=coeff * h_n, rows=rows, block_rows=block_rows, lanes=lanes,
        blocks_per_partial=bpp)

    out = pl.pallas_call(
        kernel,
        out_shape=jax.ShapeDtypeStruct((num_partials * 8, lanes), jnp.float32),
        grid=(num_partials, bpp),
        in_specs=[pl.BlockSpec((block_rows, lanes), data_map),
                  pl.BlockSpec((block_rows, lanes), data_map)],
        out_specs=pl.BlockSpec((8, lanes), lambda c, b: (c, 0)),
        scratch_shapes=[pltpu.VMEM((block_rows, lanes), jnp.float32)],
        compiler_params=pltpu.CompilerParams(
            dimension_semantics=("parallel", "arbitrary"),
            # 2 inputs x 2 bufs x 4 MiB + 4 MiB idx scratch ~= 20 MiB; explicit
            # limit keeps v5e (16 MiB default) happy, fits v7x's 64 MiB VMEM.
            vmem_limit_bytes=32 * 1024 * 1024),
    )(xb, yb)

    bulk = jnp.sum(out)

    # Exact fix-up for j in {0, 1}, where the in-kernel series is used instead
    # of H_0 = 0 / H_1 = 1.
    x01 = x[:2].astype(jnp.float32)
    y01 = y[:2].astype(jnp.float32)
    hit01 = (y01 - x01) / y01 <= acc_thresh
    h_exact01 = jnp.array([0.0, 1.0], jnp.float32)
    corr = jnp.sum(jnp.where(hit01, coeff * (_H_SERIES_AT_1 - h_exact01),
                             jnp.float32(0.0)))

    # Ragged tail (< lanes elements) in plain JAX — no padded HBM copies.
    tail = _tail_sum(x, y, n_bulk, n, acc_thresh, coeff, h_n)

    return bulk + corr + tail


def _reference(predictions, labels, acc_thresh=0.1):
    """Pure-Python/numpy reference mirroring the PyTorch f32 loop semantics."""
    x = np.asarray(predictions, np.float32)
    y = np.asarray(labels, np.float32)
    thresh = np.float32(acc_thresh)
    correct = 0
    accs = []
    for i in range(x.shape[0]):
        if (y[i] - x[i]) / y[i] <= thresh:
            correct += 1
        accs.append(100.0 * correct / (i + 1))
    return sum(accs) / len(accs)


if __name__ == "__main__":
    key = jax.random.PRNGKey(0)
    k1, k2 = jax.random.split(key)
    # 21 rows x 128 lanes (-> blocks of 8 rows: 2 full, 1 partial, 1 phantom
    # under the 2-way core split) plus a 37-element ragged tail.
    n = 21 * 128 + 37
    labels = jax.random.uniform(k1, (n,), jnp.float32, minval=1.0, maxval=2.0)
    noise = jax.random.uniform(k2, (n,), jnp.float32, minval=-0.3, maxval=0.3)
    predictions = labels + noise

    avg_acc = accuracy_pallas(predictions, labels, acc_thresh=0.1,
                              lanes=128, block_rows=8)
    avg_acc = jax.block_until_ready(avg_acc)

    ref = _reference(predictions, labels, acc_thresh=0.1)
    assert abs(float(avg_acc) - ref) < 1e-2, (float(avg_acc), ref)
    print("KERNEL_OK")
</pallas_src>

<mosaic_0001>
module attributes {stable_mosaic.version = 11 : i64} {
  func.func @_accuracy_kernel(%arg0: i32, %arg1: i32, %arg2: memref<8x128xf32, #tpu.memory_space<vmem>>, %arg3: memref<8x128xf32, #tpu.memory_space<vmem>>, %arg4: memref<8x128xf32, #tpu.memory_space<vmem>>, %arg5: memref<8x128xf32, #tpu.memory_space<vmem>>) attributes {dimension_semantics = [#tpu.dimension_semantics<parallel>, #tpu.dimension_semantics<arbitrary>], iteration_bounds = array<i64: 2, 2>, scalar_prefetch = 0 : i64, scratch_operands = 1 : i64, tpu.core_type = #tpu.core_type<tc>, window_params = [{transform_indices = @transform_0, window_bounds = array<i64: 8, 128>}, {transform_indices = @transform_1, window_bounds = array<i64: 8, 128>}, {transform_indices = @transform_2, window_bounds = array<i64: 8, 128>}]} {
    %c2_i32 = arith.constant 2 : i32
    %0 = arith.muli %arg0, %c2_i32 : i32
    %1 = arith.addi %0, %arg1 : i32
    %c0_i32 = arith.constant 0 : i32
    %2 = arith.cmpi eq, %arg1, %c0_i32 : i32
    %3 = arith.extui %2 : i1 to i32
    %c0_i32_0 = arith.constant 0 : i32
    %4 = arith.cmpi ne, %3, %c0_i32_0 : i32
    scf.if %4 {
      %cst_17 = arith.constant 0.000000e+00 : f32
      %44 = vector.broadcast %cst_17 : f32 to vector<8x128xf32>
      %c0_18 = arith.constant 0 : index
      %c0_19 = arith.constant 0 : index
      %45 = vector.load %arg4[%c0_18, %c0_19] : memref<8x128xf32, #tpu.memory_space<vmem>>, vector<8x128xf32>
      tpu.vector_store %arg4[%c0_18, %c0_19], %44 {strides = array<i32>} : memref<8x128xf32, #tpu.memory_space<vmem>>, vector<8x128xf32>,
      %46 = tpu.iota {dimensions = array<i32: 0>} : vector<8x128xi32>
      %47 = tpu.iota {dimensions = array<i32: 1>} : vector<8x128xi32>
      %c128_i32 = arith.constant 128 : i32
      %48 = vector.broadcast %c128_i32 : i32 to vector<8x128xi32>
      %49 = arith.muli %46, %48 : vector<8x128xi32>
      %50 = arith.addi %49, %47 : vector<8x128xi32>
      %51 = arith.sitofp %50 : vector<8x128xi32> to vector<8x128xf32>
      %c0_20 = arith.constant 0 : index
      %c0_21 = arith.constant 0 : index
      %52 = vector.load %arg5[%c0_20, %c0_21] : memref<8x128xf32, #tpu.memory_space<vmem>>, vector<8x128xf32>
      tpu.vector_store %arg5[%c0_20, %c0_21], %51 {strides = array<i32>} : memref<8x128xf32, #tpu.memory_space<vmem>>, vector<8x128xf32>,
    } else {
    }
    %c0 = arith.constant 0 : index
    %c0_1 = arith.constant 0 : index
    %5 = vector.load %arg2[%c0, %c0_1] : memref<8x128xf32, #tpu.memory_space<vmem>>, vector<8x128xf32>
    %c0_2 = arith.constant 0 : index
    %c0_3 = arith.constant 0 : index
    %6 = vector.load %arg3[%c0_2, %c0_3] : memref<8x128xf32, #tpu.memory_space<vmem>>, vector<8x128xf32>
    %c8_i32 = arith.constant 8 : i32
    %7 = arith.muli %1, %c8_i32 : i32
    %8 = arith.sitofp %7 : i32 to f32
    %cst = arith.constant 1.280000e+02 : f32
    %9 = arith.mulf %8, %cst : f32
    %c0_4 = arith.constant 0 : index
    %c0_5 = arith.constant 0 : index
    %10 = vector.load %arg5[%c0_4, %c0_5] : memref<8x128xf32, #tpu.memory_space<vmem>>, vector<8x128xf32>
    %11 = vector.broadcast %9 : f32 to vector<8x128xf32>
    %12 = arith.addf %11, %10 : vector<8x128xf32>
    %cst_6 = arith.constant 1.000000e+00 : f32
    %13 = vector.broadcast %cst_6 : f32 to vector<8x128xf32>
    %14 = arith.maximumf %12, %13 : vector<8x128xf32>
    %15 = tpu.reciprocal %14 {approx = true} : vector<8x128xf32> -> vector<8x128xf32>
    %16 = math.log %14 : vector<8x128xf32>
    %cst_7 = arith.constant 0.577215672 : f32
    %17 = vector.broadcast %cst_7 : f32 to vector<8x128xf32>
    %18 = arith.addf %16, %17 : vector<8x128xf32>
    %cst_8 = arith.constant 5.000000e-01 : f32
    %19 = vector.broadcast %cst_8 : f32 to vector<8x128xf32>
    %20 = arith.mulf %19, %15 : vector<8x128xf32>
    %21 = arith.addf %18, %20 : vector<8x128xf32>
    %22 = arith.mulf %15, %15 : vector<8x128xf32>
    %cst_9 = arith.constant 0.0833333358 : f32
    %23 = vector.broadcast %cst_9 : f32 to vector<8x128xf32>
    %24 = arith.mulf %23, %22 : vector<8x128xf32>
    %25 = arith.subf %21, %24 : vector<8x128xf32>
    %cst_10 = arith.constant 0.0366972461 : f32
    %26 = vector.broadcast %cst_10 : f32 to vector<8x128xf32>
    %27 = arith.mulf %26, %25 : vector<8x128xf32>
    %cst_11 = arith.constant 0.311472386 : f32
    %28 = vector.broadcast %cst_11 : f32 to vector<8x128xf32>
    %29 = arith.subf %28, %27 : vector<8x128xf32>
    %30 = arith.subf %6, %5 : vector<8x128xf32>
    %31 = arith.divf %30, %6 : vector<8x128xf32>
    %cst_12 = arith.constant 1.000000e-01 : f32
    %32 = vector.broadcast %cst_12 : f32 to vector<8x128xf32>
    %33 = arith.cmpf ole, %31, %32 : vector<8x128xf32>
    %cst_13 = arith.constant 0.000000e+00 : f32
    %34 = vector.broadcast %cst_13 : f32 to vector<8x128xf32>
    %35 = arith.select %33, %29, %34 : vector<8x128xi1>, vector<8x128xf32>
    %c1_i32 = arith.constant 1 : i32
    %36 = arith.addi %1, %c1_i32 : i32
    %c8_i32_14 = arith.constant 8 : i32
    %37 = arith.muli %36, %c8_i32_14 : i32
    %c21_i32 = arith.constant 21 : i32
    %38 = arith.cmpi sle, %37, %c21_i32 : i32
    %39 = arith.extui %38 : i1 to i32
    %c0_i32_15 = arith.constant 0 : i32
    %40 = arith.cmpi ne, %39, %c0_i32_15 : i32
    scf.if %40 {
      %c0_17 = arith.constant 0 : index
      %c0_18 = arith.constant 0 : index
      %44 = vector.load %arg4[%c0_17, %c0_18] : memref<8x128xf32, #tpu.memory_space<vmem>>, vector<8x128xf32>
      %45 = vector.shape_cast %35 : vector<8x128xf32> to vector<1x8x128xf32>
      %cst_19 = arith.constant dense<0.000000e+00> : vector<8x128xf32>
      %46 = vector.multi_reduction <add>, %45, %cst_19 [0] : vector<1x8x128xf32> to vector<8x128xf32>
      %47 = arith.addf %44, %46 : vector<8x128xf32>
      %c0_20 = arith.constant 0 : index
      %c0_21 = arith.constant 0 : index
      %48 = vector.load %arg4[%c0_20, %c0_21] : memref<8x128xf32, #tpu.memory_space<vmem>>, vector<8x128xf32>
      tpu.vector_store %arg4[%c0_20, %c0_21], %47 {strides = array<i32>} : memref<8x128xf32, #tpu.memory_space<vmem>>, vector<8x128xf32>,
    } else {
    }
    %true = arith.constant true
    %41 = arith.xori %38, %true : i1
    %42 = arith.extui %41 : i1 to i32
    %c0_i32_16 = arith.constant 0 : i32
    %43 = arith.cmpi ne, %42, %c0_i32_16 : i32
    scf.if %43 {
      %44 = tpu.iota {dimensions = array<i32: 0>} : vector<8x128xi32>
      %c8_i32_17 = arith.constant 8 : i32
      %45 = arith.muli %1, %c8_i32_17 : i32
      %46 = vector.broadcast %45 : i32 to vector<8x128xi32>
      %47 = arith.addi %46, %44 : vector<8x128xi32>
      %c21_i32_18 = arith.constant 21 : i32
      %48 = vector.broadcast %c21_i32_18 : i32 to vector<8x128xi32>
      %49 = arith.cmpi slt, %47, %48 : vector<8x128xi32>
      %c0_19 = arith.constant 0 : index
      %c0_20 = arith.constant 0 : index
      %50 = vector.load %arg4[%c0_19, %c0_20] : memref<8x128xf32, #tpu.memory_space<vmem>>, vector<8x128xf32>
      %cst_21 = arith.constant 0.000000e+00 : f32
      %51 = vector.broadcast %cst_21 : f32 to vector<8x128xf32>
      %52 = arith.select %49, %35, %51 : vector<8x128xi1>, vector<8x128xf32>
      %53 = vector.shape_cast %52 : vector<8x128xf32> to vector<1x8x128xf32>
      %cst_22 = arith.constant dense<0.000000e+00> : vector<8x128xf32>
      %54 = vector.multi_reduction <add>, %53, %cst_22 [0] : vector<1x8x128xf32> to vector<8x128xf32>
      %55 = arith.addf %50, %54 : vector<8x128xf32>
      %c0_23 = arith.constant 0 : index
      %c0_24 = arith.constant 0 : index
      %56 = vector.load %arg4[%c0_23, %c0_24] : memref<8x128xf32, #tpu.memory_space<vmem>>, vector<8x128xf32>
      tpu.vector_store %arg4[%c0_23, %c0_24], %55 {strides = array<i32>} : memref<8x128xf32, #tpu.memory_space<vmem>>, vector<8x128xf32>,
    } else {
    }
    return
  }
  func.func @transform_0(%arg0: i32, %arg1: i32) -> (i32, i32) {
    %c2_i32 = arith.constant 2 : i32
    %0 = arith.muli %arg0, %c2_i32 : i32
    %1 = arith.addi %0, %arg1 : i32
    %c2_i32_0 = arith.constant 2 : i32
    %2 = arith.minsi %1, %c2_i32_0 : i32
    %c0_i32 = arith.constant 0 : i32
    %c0_i32_1 = arith.constant 0 : i32
    return %2, %c0_i32 : i32, i32
  }
  func.func @transform_1(%arg0: i32, %arg1: i32) -> (i32, i32) {
    %c2_i32 = arith.constant 2 : i32
    %0 = arith.muli %arg0, %c2_i32 : i32
    %1 = arith.addi %0, %arg1 : i32
    %c2_i32_0 = arith.constant 2 : i32
    %2 = arith.minsi %1, %c2_i32_0 : i32
    %c0_i32 = arith.constant 0 : i32
    %c0_i32_1 = arith.constant 0 : i32
    return %2, %c0_i32 : i32, i32
  }
  func.func @transform_2(%arg0: i32, %arg1: i32) -> (i32, i32) {
    %c0_i32 = arith.constant 0 : i32
    %c0_i32_0 = arith.constant 0 : i32
    return %arg0, %c0_i32 : i32, i32
  }
}

</mosaic_0001>

<bundles_post_ra>
// kernel: tpu_custom_call.1
= control target key start
LH: loop header
LB: loop body
LE: loop exit
PB: predicated region body
PF: predicated region fallthrough
CT: control target
= control target key end

     0   :  { %s1072_s0 = inlined_call_operand.hbm [shape: f32[21,128], index: 0, kind: input, shape index: {}]   ;;  %s1073_s1 = inlined_call_operand.hbm [shape: f32[21,128], index: 1, kind: input, shape index: {}]   ;;  %s1074_s2 = inlined_call_operand.hbm [shape: f32[16,128], index: 2, kind: output, shape index: {}]  }
   0x1   :  { %1081 = sst [smem:[#allocation14_spill]] %s1072_s0 }
   0x2   :  { %7 = vsyncpa [#allocation4], 0 }
   0x3   :  { %9 = vsyncpa [#allocation4 + $0x1], 0 }
   0x4   :  { %10 = vsyncpa [#allocation7], 0 }
   0x5   :  { %12 = vsyncpa [#allocation7 + $0x1], 0 }
   0x6   :  { %13 = vsyncpa [#allocation5], 0 }
   0x7   :  { %15 = vsyncpa [#allocation5 + $0x1], 0  ;;  %s773_s9 = smov 0   ;;  %s775_s10 = smov 0  }
   0x8   :  { %s777_s11 = smov 0   ;;  %s779_s12 = smov 0  }
   0x9   :  { %s781_s13 = smov 0   ;;  %s783_s14 = smov 0  }
   0xa   :  { %s785_s15 = smov 0   ;;  %s787_s16 = smov 0  }
   0xb   :  { %s789_s17 = smov 0   ;;  %s791_s18 = smov 0  }
   0xc   :  { %s793_s19 = smov 0  }
   0xd LB: > { %s422_s20 = sadd.s32 4294967295, %s752_s19   ;;  %s423_s21 = sadd.s32 4294967294, %s752_s19   ;;  %s752_s19 = sphi %s793_s19, %s21_s19   ;;  %s748_s18 = sphi %s791_s18, %s1110_s18   ;;  %s744_s17 = sphi %s789_s17, %s1109_s17   ;;  %s740_s16 = sphi %s787_s16, %s1108_s16   ;;  %s736_s15 = sphi %s785_s15, %s1107_s15   ;;  %s732_s14 = sphi %s783_s14, %s1106_s14   ;;  %s728_s13 = sphi %s781_s13, %s1105_s13   ;;  %s724_s12 = sphi %s779_s12, %s1104_s12   ;;  %s720_s11 = sphi %s777_s11, %s1103_s11   ;;  %s716_s10 = sphi %s775_s10, %s1102_s10   ;;  %s712_s9 = sphi %s773_s9, %s1101_s9  }
   0xe   : > { %s30_s22 = sadd.s32 1, %s744_s17  ;;  %s33_s23 = sadd.s32 1, %s748_s18 }
   0xf   : > { %p31_p0 = scmp.ge.s32.totalorder %s30_s22, 2  ;;  %s424_s24 = sshll.u32 %s748_s18, 1 }
  0x10   : > { %s38_s25 = sadd.s32 %s744_s17, %s424_s24  ;;  %s48_s26 = sadd.s32 1, %s732_s14 }
  0x11   : > { %s1112_s22 = smov (%p31_p0, %s30_s22), 0  ;;  %s1114_s23 = smov (!%p31_p0, %s33_s23), %s748_s18 }
  0x12   : > { %1082 = sst [smem:[#allocation12_spill]] %s1112_s22  ;;  %p39_p1 = scmp.lt.s32.totalorder %s38_s25, 2 }
  0x13   : > { %p55_p2 = scmp.ne.s32.totalorder %s732_s14, %s728_s13  ;;  %p35_p3 = scmp.ge.s32.totalorder %s1114_s23, 2 }
  0x14   : > { %p56_p4 = scmp.eq.s32.totalorder %s752_s19, 0  ;;  %s1116_s25 = smov (!%p39_p1, %s38_s25), 2 }
  0x15   : > { %s1118_s23 = smov (%p35_p3, %s1114_s23), 0  ;;  %p61_p6 = scmp.ne.s32.totalorder %s728_s13, %s724_s12 }
  0x16   : > { %1083 = sst [smem:[#allocation13_spill]] %s1118_s23  ;;  %p845_p5 = por %p56_p4, %p55_p2 }
  0x17   : > { %s425_s28 = sshll.u32 %s1118_s23, 1  ;;  %p62_p7 = scmp.eq.s32.totalorder %s422_s20, 0 }
  0x18   : > { %s42_s29 = sadd.s32 %s425_s28, %s1112_s22  ;;  %s105_s30 = ssub.s32 %s748_s18, %s1118_s23 }
  0x19   : > { %p43_p8 = scmp.lt.s32.totalorder %s42_s29, 2  ;;  %p857_p9 = por %p62_p7, %p61_p6 }
  0x1a   : > { %p106_p10 = scmp.eq.s32.totalorder %s105_s30, 0  ;;  %s108_s4 = sadd.s32 1, %s720_s11 }
  0x1b   : > { %s1085_s3 = scalar_select %p857_p9, 1, 0 }
  0x1c   : > { %s1120_s29 = smov (!%p43_p8, %s42_s29), 2  ;;  %p118_p11 = scmp.ne.s32.totalorder %s720_s11, %s716_s10 }
  0x1d   : > { %s863_s5 = scalar_select %p106_p10, %s720_s11, %s108_s4  }
  0x1e   : > { %s45_s6 = ssub.s32 %s1116_s25, %s1120_s29  ;;  %p119_p13 = scmp.eq.s32.totalorder %s422_s20, 3 }
  0x1f   : > { %p46_p12 = scmp.eq.s32.totalorder %s45_s6, 0  ;;  %p124_p0 = scmp.ne.s32.totalorder %s716_s10, %s712_s9 }
  0x20   : > { %p125_p1 = scmp.eq.s32.totalorder %s423_s21, 3  ;;  %p877_p2 = por %p119_p13, %p118_p11 }
  0x21   : > { %s875_s7 = scalar_select %p46_p12, %s732_s14, %s48_s26  }
  0x22   : > { %s1086_s8 = scalar_select %p877_p2, 1, 0 }
  0x23   : > { %p881_p3 = por %p125_p1, %p124_p0  ;;  %p469_p4 = scmp.lt.s32.totalorder %s752_s19, 4 }
  0x24   : > { %s887_s24 = sand.u32 1, %s732_s14   ;;  %s1076_s20 = sshll.u32 %s1116_s25, 7 }
  0x25   : > { %s1087_s12 = scalar_select %p881_p3, 1, 0 }
  0x26   : > { %s1075_s28 = sshll.u32 %s887_s24, 3  ;;  %s1088_s0 = sld [smem:[#allocation14_spill]] }
  0x27   : > { %s149_s30 = scalar_lea.vmem [#allocation3], %s1075_s28  ;;  %p902_p6 = pnand %p469_p4, %p845_p5 }
  0x28   : > { %s160_s4 = sshll.u32 %s149_s30, 4  ;;  %s146_s21 = scalar_lea.sflag [#allocation4], %s887_s24  ;;  %s906_s4 = int_to_ptr.vmem [resolvable:$true] %s160_s4 }
  0x29   : > { %p568_p11 = pneg %p902_p6 }
  0x2c   : > { %s896_s29 = scalar_lea.hbm %s1088_s0, %s1076_s20  ;;  %s571_s28 = scalar_lea.hbm %s1088_s0, 384 }
  0x2d   : > { %s566_s26 = scalar_lea.hbm %s896_s29, 128  ;;  %p572_p5 = scmp.lt.u32.totalorder %s896_s29, %s1088_s0 }
  0x2e   : > { %p567_p10 = scmp.ne.s32.totalorder %s896_s29, %s566_s26  ;;  %p573_p0 = scmp.lt.u32.totalorder %s571_s28, %s566_s26 }
  0x2f   : > { %p575_p4 = scmp.lt.u32.totalorder %s566_s26, %s896_s29 }
  0x30   : > { %p569_p12 = pnand %p568_p11, %p567_p10  ;;  %p574_p1 = por %p573_p0, %p572_p5 }
  0x32   : > { %p570_p13 = pneg %p569_p12  ;;  %p576_p7 = por %p575_p4, %p574_p1 }
  0x34   : > { %p577_p8 = pnand %p576_p7, %p570_p13 }
  0x36   : > { %580 = shalt.err (!%p577_p8)
}
  0x37   : > { %s581_s22 = scalar_lea.vmem %s906_s4, 128  ;;  %s754_s27 = smov [#allocation3]  }
  0x38   : > { %p582_p10 = scmp.ne.s32.totalorder %s906_s4, %s581_s22  ;;  %s586_s30 = sshll.u32 %s754_s27, 4  ;;  %s587_s30 = int_to_ptr.vmem [resolvable:$false] %s586_s30 }
  0x39   : > { %s588_s23 = scalar_lea.vmem %s587_s30, 256  ;;  %p589_p2 = scmp.lt.s32.totalorder %s906_s4, %s587_s30 }
  0x3a   : > { %p584_p12 = pnand %p582_p10, %p568_p11  ;;  %p590_p5 = scmp.lt.s32.totalorder %s588_s23, %s581_s22 }
  0x3c   : > { %p585_p3 = pneg %p584_p12  ;;  %p591_p0 = por %p590_p5, %p589_p2 }
  0x3e   : > { %p592_p1 = pnand %p591_p0, %p585_p3 }
  0x40   : > { %595 = shalt.err (!%p592_p1)
}
  0x41   : > { %461 = dma.hbm_to_vmem [thread:$0]  (!%p902_p6), %s896_s29, 128, %s906_s4, %s146_s21  }
  0x42   : > { %p1090_p7 = scmp.lt.s32.totalorder %s752_s19, 5  ;;  %p1091_p8 = scmp.ge.s32.totalorder %s752_s19, 1 }
  0x43   : > { %s1093_s22 = sshll.u32 %s1116_s25, 7  ;;  %s1094_s30 = sshll.u32 %s887_s24, 3 }
  0x44   : > { %p940_p13 = pnand %p1091_p8, %p1090_p7  ;;  %s949_s27 = scalar_lea.hbm %s1073_s1, %s1093_s22 }
  0x45   : > { %s171_s23 = scalar_lea.vmem [#allocation6], %s1094_s30  ;;  %s168_s29 = scalar_lea.sflag [#allocation7], %s887_s24 }
  0x46   : > { %s1092_s20 = scalar_select %p940_p13, 1, 0 }
  0x47   : > { %s182_s0 = sshll.u32 %s171_s23, 4  ;;  %s596_s4 = scalar_lea.hbm %s949_s27, 128  ;;  %s183_s0 = int_to_ptr.vmem [resolvable:$true] %s182_s0 }
  0x48   : > { %p597_p2 = scmp.ne.s32.totalorder %s949_s27, %s596_s4  ;;  %s601_s22 = scalar_lea.hbm %s1073_s1, 384 }
  0x49   : > { %p602_p10 = scmp.lt.u32.totalorder %s949_s27, %s1073_s1  ;;  %p603_p12 = scmp.lt.u32.totalorder %s601_s22, %s596_s4 }
  0x4a   : > { %p599_p3 = pnand %p597_p2, %p568_p11  ;;  %p605_p0 = scmp.lt.u32.totalorder %s596_s4, %s949_s27 }
  0x4b   : > { %p604_p5 = por %p603_p12, %p602_p10 }
  0x4c   : > { %p600_p4 = pneg %p599_p3 }
  0x4d   : > { %p606_p1 = por %p605_p0, %p604_p5 }
  0x4f   : > { %p607_p7 = pnand %p606_p1, %p600_p4 }
  0x51   : > { %610 = shalt.err (!%p607_p7)
}
  0x52   : > { %s611_s24 = scalar_lea.vmem %s183_s0, 128  ;;  %s755_s30 = smov [#allocation6]  }
  0x53   : > { %p612_p8 = scmp.ne.s32.totalorder %s183_s0, %s611_s24  ;;  %s616_s23 = sshll.u32 %s755_s30, 4  ;;  %s617_s23 = int_to_ptr.vmem [resolvable:$false] %s616_s23 }
  0x54   : > { %s618_s25 = scalar_lea.vmem %s617_s23, 256  ;;  %p619_p9 = scmp.lt.s32.totalorder %s183_s0, %s617_s23 }
  0x55   : > { %p614_p2 = pnand %p612_p8, %p568_p11  ;;  %p620_p13 = scmp.lt.s32.totalorder %s618_s25, %s611_s24 }
  0x57   : > { %p615_p3 = pneg %p614_p2  ;;  %p621_p10 = por %p620_p13, %p619_p9 }
  0x59   : > { %p622_p12 = pnand %p621_p10, %p615_p3 }
  0x5b   : > { %625 = shalt.err (!%p622_p12)
}
  0x5c   : > { %464 = dma.hbm_to_vmem [thread:$0]  (!%p902_p6), %s949_s27, 128, %s183_s0, %s168_s29  }
  0x5d   : > { %p1095_p4 = scmp.ne.s32.totalorder %s1092_s20, 0 }
  0x5e   : > { %s193_s4 = sand.u32 (!%p1095_p4), 1, %s728_s13   ;;  %p1096_p11 = scmp.ne.s32.totalorder (!%p1095_p4), %s1085_s3, 0 }
  0x5f   : > { %191 = sbr.rel (%p1095_p4) target bundleno = 195 (0xc3), region = 28  ;;  %s437_s21 = sshll.u32 (!%p1095_p4), %s193_s4, 3 }
  0x60   : > { %s194_s22 = scalar_lea.sflag (!%p1095_p4), [#allocation4], %s193_s4  ;;  %s976_s28 = scalar_lea.vmem (!%p1095_p4), [#allocation3], %s437_s21 }
  0x66   : > { %699 = dma.done.wait (%p1096_p11), %s194_s22, 128  }
  0x67   : > { %701 = vsyncadd (%p1096_p11), %s194_s22, 4294967168  ;;  %s203_s26 = scalar_lea.sflag [#allocation7], %s193_s4  ;;  %s206_s6 = scalar_lea.vmem [#allocation6], %s437_s21 }
  0x68   : > { %703 = dma.done.wait (%p1096_p11), %s203_s26, 128  }
  0x69   : > { %705 = vsyncadd (%p1096_p11), %s203_s26, 4294967168  ;;  %s229_s0 = sand.u32 1, %s716_s10   ;;  %s440_s20 = sshll.u32 %s740_s16, 1 }
  0x6a   : > { %s439_s27 = sshll.u32 %s229_s0, 3  ;;  %s241_s29 = sadd.s32 %s736_s15, %s440_s20 }
  0x6b   : > { %s991_s24 = scalar_lea.vmem [#allocation8], %s439_s27  ;;  %p441_p9 = scmp.ne.s32.totalorder %s736_s15, 0 }
  0x6c   : > { %v247_v0 = vlaneseq (!%p441_p9)  ;;  %v756_v1 = vmov (!%p441_p9), 0.0  }
  0x6d   : > { %245 = sbr.rel (%p441_p9) target bundleno = 119 (0x77), region = 40  ;;  %246 = vst [vmem:[%s991_s24] sm:$0xff] (!%p441_p9), %v756_v1 }
  0x6e   : > { %v248_v2 = vshrl.u32 (!%p441_p9), %v247_v0, 7  ;;  %v250_v3 = vand.u32 (!%p441_p9), 127, %v247_v0 }
  0x70   : > { %v251_v4 = vmul.u32 (!%p441_p9), 128, %v248_v2 }
  0x72   : > { %v252_v5 = vadd.s32 (!%p441_p9), %v251_v4, %v250_v3 }
  0x74   : > { %v253_v6 = vcvt.s32.f32 %v252_v5 }
  0x76   : > { %254 = vst [vmem:[#allocation2] sm:$0xff] %v253_v6 }
  0x77 PF: > { %s995_s3 = sshll.u32 %s241_s29, 3  ;;  %v256_v11 = vld [vmem:[%s206_s6] sm:$0xff]  ;;  %v255_v13 = vld [vmem:[%s976_s28] sm:$0xff] }
  0x78   : > { %s258_s30 = scvt.s32.f32 %s995_s3  ;;  %s451_s23 = sadd.s32 8, %s995_s3  ;;  %v275_v18 = vsub.f32 %v256_v11, %v255_v13 }
  0x79   : > { %p444_p6 = scmp.gt.s32.totalorder %s451_s23, 21 }
  0x7a   : > { %s259_s15 = smul.f32 128.0, %s258_s30  ;;  %v286_v28 = vld [vmem:[%s991_s24] sm:$0xff] (!%p444_p6) }
  0x7c   : > { %v261_v8 = vstv %s259_s15 }
  0x7d   : > { %v260_v7 = vld [vmem:[#allocation2] sm:$0xff] }
  0x7e   : > { %v262_v9 = vadd.f32 %v261_v8, %v260_v7 }
  0x80   : > { %v263_v10 = vmax.f32 %v262_v9, 1.0 }
  0x82   : > { %560 = vrcp.f32 %v263_v10 }
  0x83   : > { %562 = vlog2.f32 %v263_v10 }
  0x84   : > { %564 = vrcp.f32 %v256_v11 }
  0x8c   : > { %v561_v12 = vpop.eup %560 }
  0x8d   : > { %v563_v14 = vpop.eup %562  ;;  %v270_v15 = vmul.f32 %v561_v12, %v561_v12  ;;  %v268_v17 = vmul.f32 0.5, %v561_v12 }
  0x8e   : > { %v266_v16 = vmul.f32 0.6931472, %v563_v14  ;;  %v565_v19 = vpop.eup %564 }
  0x8f   : > { %v271_v21 = vmul.f32 0.083333336, %v270_v15  ;;  %v277_v23 = vmul.f32 %v565_v19, %v275_v18 }
  0x90   : > { %v267_v20 = vadd.f32 0.5772157, %v266_v16 }
  0x91   : > { %vm278_vm0 = vcmp.le.f32.partialorder %v277_v23, 0.1 }
  0x92   : > { %v269_v22 = vadd.f32 %v268_v17, %v267_v20 }
  0x94   : > { %v272_v24 = vsub.f32 %v269_v22, %v271_v21  ;;  %285 = sbr.rel (%p444_p6) target bundleno = 158 (0x9e), region = 44 }
  0x96   : > { %v273_v25 = vmul.f32 0.036697246, %v272_v24 }
  0x98   : > { %v274_v26 = vsub.f32 0.3114724, %v273_v25 }
  0x9a   : > { %v279_v27 = vsel %vm278_vm0, %v274_v26, 0.0 }
  0x9b   : > { %v288_v29 = vadd.f32 %v286_v28, %v279_v27 }
  0x9d   : > { %289 = vst [vmem:[%s991_s24] sm:$0xff] %v288_v29 }
  0x9e PF: > { %p445_p13 = scmp.le.s32.totalorder %s451_s23, 21 }
  0x9f   : > { %v294_v30 = vlaneseq (!%p445_p13)  ;;  %v296_v31 = vstv (!%p445_p13), %s995_s3 }
  0xa0   : > { %293 = sbr.rel (%p445_p13) target bundleno = 170 (0xaa), region = 48 }
  0xa1   : > { %v295_v32 = vshrl.u32 (!%p445_p13), %v294_v30, 7 }
  0xa3   : > { %v297_v33 = vadd.s32 (!%p445_p13), %v296_v31, %v295_v32 }
  0xa4   : > { %v299_v34 = vld [vmem:[%s991_s24] sm:$0xff] (!%p445_p13) }
  0xa5   : > { %vm298_vm1 = vcmp.lt.s32.totalorder (!%p445_p13), %v297_v33, 21 }
  0xa6   : > { %v300_v35 = vsel (!%p445_p13), %vm298_vm1, %v279_v27, 0.0 }
  0xa7   : > { %v302_v36 = vadd.f32 %v300_v35, %v299_v34 }
  0xa9   : > { %303 = vst [vmem:[%s991_s24] sm:$0xff] %v302_v36 }
  0xaa PF: > { %s447_s25 = sshll.u32 %s740_s16, 7  ;;  %s318_s28 = sshll.u32 %s991_s24, 4  ;;  %s319_s28 = int_to_ptr.vmem [resolvable:$true] %s318_s28 }
  0xab   : > { %s1013_s22 = scalar_lea.hbm %s1074_s2, %s447_s25  ;;  %s305_s26 = scalar_lea.sflag [#allocation5], %s229_s0 }
  0xac   : > { %s626_s6 = scalar_lea.vmem %s319_s28, 128  ;;  %p1097_p0 = scmp.ne.s32.totalorder %s1086_s8, 0 }
  0xad   : > { %p627_p5 = scmp.ne.s32.totalorder %s319_s28, %s626_s6  ;;  %s757_s20 = smov [#allocation8]  }
  0xae   : > { %s630_s27 = sshll.u32 %s757_s20, 4  ;;  %s631_s27 = int_to_ptr.vmem [resolvable:$false] %s630_s27 }
  0xaf   : > { %p628_p1 = pnand %p627_p5, %p1097_p0  ;;  %s632_s29 = scalar_lea.vmem %s631_s27, 256 }
  0xb0   : > { %p633_p8 = scmp.lt.s32.totalorder %s319_s28, %s631_s27  ;;  %p634_p2 = scmp.lt.s32.totalorder %s632_s29, %s626_s6 }
  0xb1   : > { %p629_p7 = pneg %p628_p1 }
  0xb2   : > { %p635_p3 = por %p634_p2, %p633_p8 }
  0xb4   : > { %p636_p10 = pnand %p635_p3, %p629_p7 }
  0xb6   : > { %639 = shalt.err (!%p636_p10)
}
  0xb7   : > { %s640_s16 = scalar_lea.hbm %s1013_s22, 128  ;;  %s644_s3 = scalar_lea.hbm %s1074_s2, 256 }
  0xb8   : > { %p641_p12 = scmp.ne.s32.totalorder %s1013_s22, %s640_s16  ;;  %p645_p9 = scmp.lt.u32.totalorder %s1013_s22, %s1074_s2 }
  0xb9   : > { %p646_p6 = scmp.lt.u32.totalorder %s644_s3, %s640_s16  ;;  %p648_p5 = scmp.lt.u32.totalorder %s640_s16, %s1013_s22 }
  0xba   : > { %p642_p4 = pnand %p641_p12, %p1097_p0 }
  0xbb   : > { %p647_p13 = por %p646_p6, %p645_p9 }
  0xbc   : > { %p643_p11 = pneg %p642_p4 }
  0xbd   : > { %p649_p1 = por %p648_p5, %p647_p13 }
  0xbf   : > { %p650_p7 = pnand %p649_p1, %p643_p11 }
  0xc1   : > { %653 = shalt.err (!%p650_p7)
}
  0xc2   : > { %456 = dma.vmem_to_hbm [thread:$0]  (%p1097_p0), %s319_s28, 128, %s1013_s22, %s305_s26  }
  0xc3 PF: > { %p470_p8 = scmp.ge.s32.totalorder %s752_s19, 2  ;;  %s330_s15 = sand.u32 1, %s712_s9  }
  0xc4   : > { %p1098_p2 = scmp.ne.s32.totalorder %s1087_s12, 0  ;;  %s331_s25 = scalar_lea.sflag [#allocation5], %s330_s15 }
  0xc6   : > { %p466_p3 = pnand %p470_p8, %p1098_p2 }
  0xc8   : > { %707 = dma.done.wait (!%p466_p3), %s331_s25, 128  }
  0xc9   : > { %709 = vsyncadd (!%p466_p3), %s331_s25, 4294967168  ;;  %s21_s19 = sadd.s32 1, %s752_s19   ;;  %s1099_s8 = sld [smem:[#allocation12_spill]] }
  0xca   : > { %p18_p10 = scmp.ge.s32.totalorder %s21_s19, 6   ;;  %s1100_s4 = sld [smem:[#allocation13_spill]] }
  0xcb   : > { %s1101_s9 = smov %s716_s10  ;;  %s1102_s10 = smov %s720_s11 }
  0xcc   : > { %s1103_s11 = smov %s863_s5  ;;  %s1104_s12 = smov %s728_s13 }
  0xcd   : > { %s1105_s13 = smov %s732_s14  ;;  %s1106_s14 = smov %s875_s7 }
  0xce   : > { %s1107_s15 = smov %s744_s17  ;;  %s1108_s16 = smov %s748_s18 }
  0xcf   : > { %s1109_s17 = smov %s1099_s8  ;;  %20 = sbr.rel (!%p18_p10) target bundleno = 13 (0xd), region = 98 }
  0xd0   : > { %s1110_s18 = smov %s1100_s4 }
  0xd6   :  { %336 = vsyncpa [#allocation4], 1 }
  0xd7   :  { %338 = vsyncpa [#allocation4 + $0x1], 1 }
  0xd8   :  { %339 = vsyncpa [#allocation7], 1 }
  0xd9   :  { %341 = vsyncpa [#allocation7 + $0x1], 1 }
  0xda   :  { %342 = vsyncpa [#allocation5], 1 }
  0xdb   :  { %344 = vsyncpa [#allocation5 + $0x1], 1 }

</bundles_post_ra>
